<compile_context>
chip_gen: v7x
topology: tpu7x:2x2x1
jax: 0.10.0
libtpu: 0.0.40
codegen_flags: <defaults>
</compile_context>

<pallas_src>
import math

import jax
import jax.numpy as jnp
from jax.experimental import pallas as pl
from jax.experimental.pallas import tpu as pltpu


# ------------------------------ tiling helper --------------------------------

def _pick_tile(dim, preferred, align):
    """Largest multiple of `align` that divides `dim` and is <= preferred, else `dim`
    (a full-extent block is always legal)."""
    if dim <= preferred:
        return dim
    t = (preferred // align) * align
    while t >= align:
        if dim % t == 0:
            return t
        t -= align
    return dim


# --------------------------- tiled linear (x@W + b) ---------------------------

def _linear_kernel(x_ref, w_ref, b_ref, o_ref, acc_ref):
    k = pl.program_id(2)

    @pl.when(k == 0)
    def _init():
        acc_ref[...] = jnp.zeros_like(acc_ref)

    acc_ref[...] += jnp.dot(x_ref[...], w_ref[...],
                            preferred_element_type=jnp.float32)

    @pl.when(k == pl.num_programs(2) - 1)
    def _finalize():
        o_ref[...] = (acc_ref[...] + b_ref[...]).astype(o_ref.dtype)


def pallas_linear(x2d, w, b, *, mxu_dtype=jnp.float32,
                  tm_pref=256, tn_pref=256, tk_pref=512):
    """x2d: (M, K); w: (K, N); b: (N,) -> (M, N) in f32."""
    M, K = x2d.shape
    K2, N = w.shape
    assert K == K2
    tm = _pick_tile(M, tm_pref, 8)
    tn = _pick_tile(N, tn_pref, 128)
    tk = _pick_tile(K, tk_pref, 128)

    xc = x2d.astype(mxu_dtype)        # cast in wrapper -> fewer HBM bytes in bf16 mode
    wc = w.astype(mxu_dtype)
    b2d = b.reshape(1, N).astype(jnp.float32)
    itm = jnp.dtype(mxu_dtype).itemsize

    cost = pl.CostEstimate(
        flops=2 * M * N * K,
        transcendentals=0,
        bytes_accessed=itm * (M * K + K * N) + 4 * (M * N + N),
    )
    return pl.pallas_call(
        _linear_kernel,
        out_shape=jax.ShapeDtypeStruct((M, N), jnp.float32),
        grid=(M // tm, N // tn, K // tk),
        in_specs=[
            pl.BlockSpec((tm, tk), lambda i, j, k: (i, k)),
            pl.BlockSpec((tk, tn), lambda i, j, k: (k, j)),
            pl.BlockSpec((1, tn), lambda i, j, k: (0, j)),
        ],
        out_specs=pl.BlockSpec((tm, tn), lambda i, j, k: (i, j)),
        scratch_shapes=[pltpu.VMEM((tm, tn), jnp.float32)],
        compiler_params=pltpu.CompilerParams(
            dimension_semantics=("parallel", "parallel", "arbitrary")),
        cost_estimate=cost,
    )(xc, wc, b2d)


# ---------- flash-style multi-head attention + fused output projection --------

def make_mha_proj_kernel(n_heads, head_dim, inv_scale, has_mask, mxu_dtype):
    dims_qk = (((1,), (1,)), ((), ()))   # (tq,Dh) . (tkv,Dh)^T -> (tq,tkv)
    dims_pv = (((1,), (0,)), ((), ()))   # (tq,tkv) . (tkv,Dh)  -> (tq,Dh)

    def body(q_ref, k_ref, v_ref, mask_ref, wp_ref, bp_ref, o_ref,
             m_sc, l_sc, acc_sc):
        kv_i = pl.program_id(2)

        @pl.when(kv_i == 0)
        def _init():
            m_sc[...] = jnp.full_like(m_sc, -jnp.inf)
            l_sc[...] = jnp.zeros_like(l_sc)
            acc_sc[...] = jnp.zeros_like(acc_sc)

        q_blk = q_ref[0]                      # (tq, D)   lane-dense, mxu_dtype
        k_blk = k_ref[0]                      # (tkv, D)
        v_blk = v_ref[0]                      # (tkv, D)
        mask_tile = mask_ref[...] if has_mask else None   # (tq, tkv) f32

        # unrolled per-head loop: head split happens in-VMEM, never in HBM
        for h in range(n_heads):
            sl = slice(h * head_dim, (h + 1) * head_dim)
            qh = q_blk[:, sl] * inv_scale     # scale folded into Q
            kh = k_blk[:, sl]
            vh = v_blk[:, sl]

            s = jax.lax.dot_general(qh, kh, dims_qk,
                                    preferred_element_type=jnp.float32)  # (tq, tkv)
            if has_mask:
                s = s + mask_tile

            m_prev = m_sc[h]                                  # (tq, 1)
            m_new = jnp.maximum(m_prev, jnp.max(s, axis=-1, keepdims=True))
            alpha = jnp.exp(m_prev - m_new)                   # (tq, 1)
            p = jnp.exp(s - m_new)                            # (tq, tkv) f32
            l_sc[h] = alpha * l_sc[h] + jnp.sum(p, axis=-1, keepdims=True)
            pv = jax.lax.dot_general(p.astype(mxu_dtype), vh, dims_pv,
                                     preferred_element_type=jnp.float32)  # (tq, Dh)
            acc_sc[:, sl] = alpha * acc_sc[:, sl] + pv
            m_sc[h] = m_new

        @pl.when(kv_i == pl.num_programs(2) - 1)
        def _finalize():
            # normalize per head (l is per head), then fused output projection
            for h in range(n_heads):
                sl = slice(h * head_dim, (h + 1) * head_dim)
                inv_l = pl.reciprocal(jnp.maximum(l_sc[h], 1e-30), approx=True)
                acc_sc[:, sl] = acc_sc[:, sl] * inv_l
            atn = acc_sc[...].astype(mxu_dtype)               # (tq, D) lane-dense
            proj = jnp.dot(atn, wp_ref[...],
                           preferred_element_type=jnp.float32) + bp_ref[...]
            o_ref[0] = proj.astype(o_ref.dtype)               # single (tq, D) store

    if has_mask:
        def kernel(q_ref, k_ref, v_ref, mask_ref, wp_ref, bp_ref, o_ref,
                   m_sc, l_sc, acc_sc):
            body(q_ref, k_ref, v_ref, mask_ref, wp_ref, bp_ref, o_ref,
                 m_sc, l_sc, acc_sc)
    else:
        def kernel(q_ref, k_ref, v_ref, wp_ref, bp_ref, o_ref,
                   m_sc, l_sc, acc_sc):
            body(q_ref, k_ref, v_ref, None, wp_ref, bp_ref, o_ref,
                 m_sc, l_sc, acc_sc)
    return kernel


def pallas_mha_proj(qp, kp, vp, mask, wp, bp, *, n_heads, inv_scale,
                    mxu_dtype=jnp.float32, tq_pref=256, tkv_pref=256):
    """qp: (B, Sq, D); kp/vp: (B, Skv, D); mask: additive (Sq, Skv) or None;
    wp: (D, D); bp: (D,).  Returns projected attention output (B, Sq, D) f32."""
    B, Sq, D = qp.shape
    Skv = kp.shape[1]
    head_dim = D // n_heads
    tq = _pick_tile(Sq, tq_pref, 8)
    tkv = _pick_tile(Skv, tkv_pref, 128)
    has_mask = mask is not None

    qc = qp.astype(mxu_dtype)
    kc = kp.astype(mxu_dtype)
    vc = vp.astype(mxu_dtype)
    wpc = wp.astype(mxu_dtype)
    bp2d = bp.reshape(1, D).astype(jnp.float32)
    itm = jnp.dtype(mxu_dtype).itemsize

    in_specs = [
        pl.BlockSpec((1, tq, D), lambda b, qi, ki: (b, qi, 0)),
        pl.BlockSpec((1, tkv, D), lambda b, qi, ki: (b, ki, 0)),
        pl.BlockSpec((1, tkv, D), lambda b, qi, ki: (b, ki, 0)),
    ]
    inputs = [qc, kc, vc]
    if has_mask:
        in_specs.append(pl.BlockSpec((tq, tkv), lambda b, qi, ki: (qi, ki)))
        inputs.append(mask.astype(jnp.float32))
    in_specs.append(pl.BlockSpec((D, D), lambda b, qi, ki: (0, 0)))   # wp resident
    inputs.append(wpc)
    in_specs.append(pl.BlockSpec((1, D), lambda b, qi, ki: (0, 0)))   # bp resident
    inputs.append(bp2d)

    cost = pl.CostEstimate(
        flops=4 * B * n_heads * Sq * Skv * head_dim + 2 * B * Sq * D * D,
        transcendentals=B * n_heads * Sq * Skv,
        bytes_accessed=itm * (B * Sq * D + 2 * B * Skv * D + D * D)
        + 4 * (B * Sq * D + D) + (4 * Sq * Skv if has_mask else 0),
    )
    return pl.pallas_call(
        make_mha_proj_kernel(n_heads, head_dim, inv_scale, has_mask, mxu_dtype),
        out_shape=jax.ShapeDtypeStruct((B, Sq, D), jnp.float32),
        grid=(B, Sq // tq, Skv // tkv),
        in_specs=in_specs,
        out_specs=pl.BlockSpec((1, tq, D), lambda b, qi, ki: (b, qi, 0)),
        scratch_shapes=[
            pltpu.VMEM((n_heads, tq, 1), jnp.float32),   # running max m
            pltpu.VMEM((n_heads, tq, 1), jnp.float32),   # running denom l
            pltpu.VMEM((tq, D), jnp.float32),            # output accumulator (lane-dense)
        ],
        compiler_params=pltpu.CompilerParams(
            dimension_semantics=("parallel", "parallel", "arbitrary")),
        cost_estimate=cost,
    )(*inputs)


# ------------------------------ forward pass ----------------------------------

def attention_forward(params, q, k, v, mask=None, *, n_heads, mxu_bf16=False):
    """Pallas implementation of Attention.forward.
    q: (B, Sq, D); k, v: (B, Skv, D); mask: additive (Sq, Skv) or None -> (B, Sq, D)."""
    B, Sq, D = q.shape
    Skv = k.shape[1]
    assert D % n_heads == 0
    head_dim = D // n_heads
    inv_scale = 1.0 / math.sqrt(head_dim)
    mxu_dtype = jnp.bfloat16 if mxu_bf16 else jnp.float32

    if (q is k) and (k is v):
        # self-attention: fuse Q|K|V into one (D, 3D) projection (one pass over x)
        w_qkv = jnp.concatenate([params["wq"], params["wk"], params["wv"]], axis=1)
        b_qkv = jnp.concatenate([params["bq"], params["bk"], params["bv"]])
        qkv = pallas_linear(q.reshape(B * Sq, D), w_qkv, b_qkv, mxu_dtype=mxu_dtype)
        Q, K, V = qkv[:, :D], qkv[:, D:2 * D], qkv[:, 2 * D:]
    else:
        Q = pallas_linear(q.reshape(B * Sq, D), params["wq"], params["bq"], mxu_dtype=mxu_dtype)
        K = pallas_linear(k.reshape(B * Skv, D), params["wk"], params["bk"], mxu_dtype=mxu_dtype)
        V = pallas_linear(v.reshape(B * Skv, D), params["wv"], params["bv"], mxu_dtype=mxu_dtype)

    # attention consumes lane-dense (B, S, D); heads split in-kernel; output
    # projection (wp, bp) fused into the attention finalize -> result is final.
    return pallas_mha_proj(
        Q.reshape(B, Sq, D), K.reshape(B, Skv, D), V.reshape(B, Skv, D),
        mask, params["wp"], params["bp"],
        n_heads=n_heads, inv_scale=inv_scale, mxu_dtype=mxu_dtype)


# ----------------------------- reference (JAX) --------------------------------

def attention_reference(params, q, k, v, mask=None, *, n_heads):
    B, Sq, D = q.shape
    Skv = k.shape[1]
    head_dim = D // n_heads
    scale_f = math.sqrt(head_dim)
    Q = q @ params["wq"] + params["bq"]
    K = k @ params["wk"] + params["bk"]
    V = v @ params["wv"] + params["bv"]
    Qh = Q.reshape(B, Sq, n_heads, head_dim).transpose(0, 2, 1, 3)
    Kh = K.reshape(B, Skv, n_heads, head_dim).transpose(0, 2, 1, 3)
    Vh = V.reshape(B, Skv, n_heads, head_dim).transpose(0, 2, 1, 3)
    s = jnp.einsum("bhqd,bhkd->bhqk", Qh, Kh) / scale_f
    if mask is not None:
        s = s + mask[None, None]
    p = jax.nn.softmax(s, axis=-1)
    o = jnp.einsum("bhqk,bhkd->bhqd", p, Vh)
    o = o.transpose(0, 2, 1, 3).reshape(B, Sq, D)
    return o @ params["wp"] + params["bp"]


# --------------------------------- main ----------------------------------------

def init_params(key, d):
    """Deterministic PyTorch-Linear-style init; weights stored as (d_in, d_out)."""
    bound = 1.0 / math.sqrt(d)
    keys = jax.random.split(key, 8)
    u = lambda kk, shape: jax.random.uniform(kk, shape, jnp.float32, -bound, bound)
    return {
        "wq": u(keys[0], (d, d)), "bq": u(keys[1], (d,)),
        "wk": u(keys[2], (d, d)), "bk": u(keys[3], (d,)),
        "wv": u(keys[4], (d, d)), "bv": u(keys[5], (d,)),
        "wp": u(keys[6], (d, d)), "bp": u(keys[7], (d,)),
    }


if __name__ == "__main__":
    # small config consistent with the module (embed scaled down): D=128, 4 heads
    D, H = 128, 4
    B, S = 2, 512

    key = jax.random.PRNGKey(0)
    kx, kq, kk, kv, kp = jax.random.split(key, 5)
    params = init_params(kp, D)

    # ---- 1) self-attention: fused QKV projection, causal mask, f32 MXU ----
    x = jax.random.normal(kx, (B, S, D), jnp.float32)
    mask = jnp.where(jnp.tril(jnp.ones((S, S), jnp.bool_)), 0.0, -1e9).astype(jnp.float32)
    out = jax.block_until_ready(attention_forward(params, x, x, x, mask, n_heads=H))
    ref = attention_reference(params, x, x, x, mask, n_heads=H)
    assert out.shape == (B, S, D)
    err = float(jnp.max(jnp.abs(out - ref)))
    assert jnp.allclose(out, ref, atol=2e-3, rtol=2e-3), f"self-attn mismatch (max err {err})"

    # ---- 2) cross-attention: separate q/k/v, Sq != Skv, no mask, f32 MXU ----
    Sq, Skv = 256, 512
    q = jax.random.normal(kq, (B, Sq, D), jnp.float32)
    k = jax.random.normal(kk, (B, Skv, D), jnp.float32)
    v = jax.random.normal(kv, (B, Skv, D), jnp.float32)
    out2 = jax.block_until_ready(attention_forward(params, q, k, v, None, n_heads=H))
    ref2 = attention_reference(params, q, k, v, None, n_heads=H)
    err2 = float(jnp.max(jnp.abs(out2 - ref2)))
    assert jnp.allclose(out2, ref2, atol=2e-3, rtol=2e-3), f"cross-attn mismatch (max err {err2})"

    # ---- 3) bf16 MXU operands (v6e/v7x fast path), f32 accumulation/softmax ----
    out3 = jax.block_until_ready(
        attention_forward(params, x, x, x, mask, n_heads=H, mxu_bf16=True))
    err3 = float(jnp.max(jnp.abs(out3 - ref)))
    assert jnp.allclose(out3, ref, atol=5e-2, rtol=5e-2), f"bf16 mismatch (max err {err3})"

    print("KERNEL_OK")
</pallas_src>

<mosaic_0001>
module attributes {stable_mosaic.version = 11 : i64} {
  func.func @_linear_kernel(%arg0: i32, %arg1: i32, %arg2: i32, %arg3: memref<256x128xf32, #tpu.memory_space<vmem>>, %arg4: memref<128x128xf32, #tpu.memory_space<vmem>>, %arg5: memref<1x128xf32, #tpu.memory_space<vmem>>, %arg6: memref<256x128xf32, #tpu.memory_space<vmem>>, %arg7: memref<256x128xf32, #tpu.memory_space<vmem>>) attributes {dimension_semantics = [#tpu.dimension_semantics<parallel>, #tpu.dimension_semantics<parallel>, #tpu.dimension_semantics<arbitrary>], iteration_bounds = array<i64: 4, 3, 1>, scalar_prefetch = 0 : i64, scratch_operands = 1 : i64, tpu.core_type = #tpu.core_type<tc>, window_params = [{transform_indices = @transform_0, window_bounds = array<i64: 256, 128>}, {transform_indices = @transform_1, window_bounds = array<i64: 128, 128>}, {transform_indices = @transform_2, window_bounds = array<i64: 1, 128>}, {transform_indices = @transform_3, window_bounds = array<i64: 256, 128>}]} {
    %c0_i32 = arith.constant 0 : i32
    %0 = arith.cmpi eq, %arg2, %c0_i32 : i32
    %1 = arith.extui %0 : i1 to i32
    %c0_i32_0 = arith.constant 0 : i32
    %2 = arith.cmpi ne, %1, %c0_i32_0 : i32
    scf.if %2 {
      %cst_10 = arith.constant 0.000000e+00 : f32
      %12 = vector.broadcast %cst_10 : f32 to vector<256x128xf32>
      %c0_11 = arith.constant 0 : index
      %c0_12 = arith.constant 0 : index
      %13 = vector.load %arg7[%c0_11, %c0_12] : memref<256x128xf32, #tpu.memory_space<vmem>>, vector<256x128xf32>
      tpu.vector_store %arg7[%c0_11, %c0_12], %12 {strides = array<i32>} : memref<256x128xf32, #tpu.memory_space<vmem>>, vector<256x128xf32>,
    } else {
    }
    %c0 = arith.constant 0 : index
    %c0_1 = arith.constant 0 : index
    %3 = vector.load %arg7[%c0, %c0_1] : memref<256x128xf32, #tpu.memory_space<vmem>>, vector<256x128xf32>
    %c0_2 = arith.constant 0 : index
    %c0_3 = arith.constant 0 : index
    %4 = vector.load %arg3[%c0_2, %c0_3] : memref<256x128xf32, #tpu.memory_space<vmem>>, vector<256x128xf32>
    %c0_4 = arith.constant 0 : index
    %c0_5 = arith.constant 0 : index
    %5 = vector.load %arg4[%c0_4, %c0_5] : memref<128x128xf32, #tpu.memory_space<vmem>>, vector<128x128xf32>
    %cst = arith.constant dense<0.000000e+00> : vector<256x128xf32>
    %6 = tpu.matmul %4, %5, %cst {dimension_numbers = #tpu.dot_dimension_numbers<[1], [0], [0], [1], [0, 0, 1, 1], [], []>} : vector<256x128xf32>, vector<128x128xf32>, vector<256x128xf32> -> vector<256x128xf32>
    %7 = arith.addf %3, %6 : vector<256x128xf32>
    %c0_6 = arith.constant 0 : index
    %c0_7 = arith.constant 0 : index
    %8 = vector.load %arg7[%c0_6, %c0_7] : memref<256x128xf32, #tpu.memory_space<vmem>>, vector<256x128xf32>
    tpu.vector_store %arg7[%c0_6, %c0_7], %7 {strides = array<i32>} : memref<256x128xf32, #tpu.memory_space<vmem>>, vector<256x128xf32>,
    %c0_i32_8 = arith.constant 0 : i32
    %9 = arith.cmpi eq, %arg2, %c0_i32_8 : i32
    %10 = arith.extui %9 : i1 to i32
    %c0_i32_9 = arith.constant 0 : i32
    %11 = arith.cmpi ne, %10, %c0_i32_9 : i32
    scf.if %11 {
      %c0_10 = arith.constant 0 : index
      %c0_11 = arith.constant 0 : index
      %12 = vector.load %arg7[%c0_10, %c0_11] : memref<256x128xf32, #tpu.memory_space<vmem>>, vector<256x128xf32>
      %c0_12 = arith.constant 0 : index
      %c0_13 = arith.constant 0 : index
      %13 = vector.load %arg5[%c0_12, %c0_13] : memref<1x128xf32, #tpu.memory_space<vmem>>, vector<1x128xf32>
      %14 = vector.broadcast %13 : vector<1x128xf32> to vector<256x128xf32>
      %15 = arith.addf %12, %14 : vector<256x128xf32>
      %c0_14 = arith.constant 0 : index
      %c0_15 = arith.constant 0 : index
      %16 = vector.load %arg6[%c0_14, %c0_15] : memref<256x128xf32, #tpu.memory_space<vmem>>, vector<256x128xf32>
      tpu.vector_store %arg6[%c0_14, %c0_15], %15 {strides = array<i32>} : memref<256x128xf32, #tpu.memory_space<vmem>>, vector<256x128xf32>,
    } else {
    }
    return
  }
  func.func @transform_0(%arg0: i32, %arg1: i32, %arg2: i32) -> (i32, i32) {
    %c0_i32 = arith.constant 0 : i32
    return %arg0, %arg2 : i32, i32
  }
  func.func @transform_1(%arg0: i32, %arg1: i32, %arg2: i32) -> (i32, i32) {
    %c0_i32 = arith.constant 0 : i32
    return %arg2, %arg1 : i32, i32
  }
  func.func @transform_2(%arg0: i32, %arg1: i32, %arg2: i32) -> (i32, i32) {
    %c0_i32 = arith.constant 0 : i32
    %c0_i32_0 = arith.constant 0 : i32
    return %c0_i32, %arg1 : i32, i32
  }
  func.func @transform_3(%arg0: i32, %arg1: i32, %arg2: i32) -> (i32, i32) {
    %c0_i32 = arith.constant 0 : i32
    return %arg0, %arg1 : i32, i32
  }
}

</mosaic_0001>

<bundles_post_ra>
// kernel: tpu_custom_call.1
= control target key start
LH: loop header
LB: loop body
LE: loop exit
PB: predicated region body
PF: predicated region fallthrough
CT: control target
= control target key end

     0   :  { %s2083_s0 = inlined_call_operand.hbm [shape: f32[1024,128], index: 0, kind: input, shape index: {}]   ;;  %s2084_s1 = inlined_call_operand.hbm [shape: f32[128,384], index: 1, kind: input, shape index: {}]   ;;  %s2085_s2 = inlined_call_operand.hbm [shape: f32[1,384], index: 2, kind: input, shape index: {}]   ;;  %s2086_s3 = inlined_call_operand.hbm [shape: f32[1024,384], index: 3, kind: output, shape index: {}]  }
   0x1   :  { %2104 = sst [smem:[#allocation25_spill]] %s2084_s1 }
   0x2   :  { %2105 = sst [smem:[#allocation26_spill]] %s2086_s3 }
   0x3   :  { %8 = vsyncpa [#allocation4], 0 }
   0x4   :  { %10 = vsyncpa [#allocation4 + $0x1], 0 }
   0x5   :  { %11 = vsyncpa [#allocation7], 0 }
   0x6   :  { %13 = vsyncpa [#allocation7 + $0x1], 0 }
   0x7   :  { %14 = vsyncpa [#allocation5], 0 }
   0x8   :  { %16 = vsyncpa [#allocation5 + $0x1], 0  ;;  %s1564_s12 = smov 0   ;;  %s1566_s13 = smov 0  }
   0x9   :  { %s1568_s14 = smov 0   ;;  %s1570_s15 = smov 0  }
   0xa   :  { %s1572_s16 = smov 0   ;;  %s1574_s17 = smov 0  }
   0xb   :  { %s1576_s18 = smov 0   ;;  %s1578_s19 = smov 0  }
   0xc   :  { %s1580_s20 = smov 0   ;;  %s1582_s21 = smov 0  }
   0xd   :  { %s1584_s22 = smov 0   ;;  %s1586_s23 = smov 0  }
   0xe   :  { %s1588_s24 = smov 0   ;;  %s1590_s25 = smov 0  }
   0xf LB: > { %2106 = sst [smem:[#allocation13_spill]] %s1488_s14  ;;  %s37_s26 = sadd.s32 1, %s1524_s23  ;;  %s1532_s25 = sphi %s1590_s25, %s22_s25   ;;  %s1528_s24 = sphi %s1588_s24, %s2166_s24   ;;  %s1524_s23 = sphi %s1586_s23, %s2165_s23   ;;  %s1520_s22 = sphi %s1584_s22, %s2155_s22   ;;  %s1516_s21 = sphi %s1582_s21, %s2154_s21   ;;  %s1512_s20 = sphi %s1580_s20, %s2153_s20   ;;  %s1508_s19 = sphi %s1578_s19, %s2164_s19   ;;  %s1504_s18 = sphi %s1576_s18, %s2163_s18   ;;  %s1500_s17 = sphi %s1574_s17, %s2151_s17   ;;  %s1496_s16 = sphi %s1572_s16, %s2162_s16   ;;  %s1492_s15 = sphi %s1570_s15, %s2161_s15   ;;  %s1488_s14 = sphi %s1568_s14, %s2149_s14   ;;  %s1484_s13 = sphi %s1566_s13, %s2160_s13   ;;  %s1480_s12 = sphi %s1564_s12, %s2159_s12  }
  0x10   : > { %2107 = sst [smem:[#allocation14_spill]] %s1500_s17  ;;  %p2089_p0 = scmp.eq.s32.totalorder %s1532_s25, 0 }
  0x11   : > { %2108 = sst [smem:[#allocation15_spill]] %s1512_s20  ;;  %p1638_p1 = scmp.ge.s32.totalorder %s37_s26, 3 }
  0x12   : > { %2109 = sst [smem:[#allocation16_spill]] %s1516_s21  ;;  %p85_p2 = scmp.ne.s32.totalorder %s1500_s17, %s1496_s16 }
  0x13   : > { %2110 = sst [smem:[#allocation17_spill]] %s1520_s22  ;;  %p2088_p4 = scmp.lt.s32.totalorder %s1532_s25, 12 }
  0x14   : > { %2111 = sst [smem:[#allocation18_spill]] %s1524_s23  ;;  %p87_p5 = por %p85_p2, %p2089_p0 }
  0x15   : > { %2112 = sst [smem:[#allocation19_spill]] %s1528_s24  ;;  %s191_s29 = sand.u32 1, %s1532_s25  }
  0x16   : > { %s2087_s30 = sand.u32 1, %s1500_s17   ;;  %s959_s5 = sshll.u32 %s1524_s23, 7 }
  0x17   : > { %s958_s4 = sshll.u32 %s2087_s30, 7  ;;  %s2114_s1 = sld [smem:[#allocation25_spill]] }
  0x18   : > { %s195_s9 = scalar_lea.vmem [#allocation6], %s958_s4  ;;  %p1662_p6 = pnand %p2088_p4, %p87_p5 }
  0x19   : > { %s204_s10 = sshll.u32 %s195_s9, 4  ;;  %s1669_s30 = scalar_lea.sflag [#allocation7], %s191_s29  ;;  %s1666_s10 = int_to_ptr.vmem [resolvable:$true] %s204_s10 }
  0x1a   : > { %p2100_p9 = pneg %p1662_p6 }
  0x1d   : > { %s1658_s8 = scalar_lea.hbm %s2114_s1, %s959_s5  ;;  %s1297_s7 = scalar_lea.hbm %s2114_s1, 6144 }
  0x1e   : > { %s1292_s5 = scalar_lea.hbm %s1658_s8, 2048  ;;  %p1298_p12 = scmp.lt.u32.totalorder %s1658_s8, %s2114_s1 }
  0x1f   : > { %p1293_p8 = scmp.ne.s32.totalorder %s1658_s8, %s1292_s5  ;;  %p1299_p13 = scmp.lt.u32.totalorder %s1297_s7, %s1292_s5 }
  0x20   : > { %p1301_p5 = scmp.lt.u32.totalorder %s1292_s5, %s1658_s8 }
  0x21   : > { %p1295_p10 = pnand %p2100_p9, %p1293_p8  ;;  %p1300_p2 = por %p1299_p13, %p1298_p12 }
  0x23   : > { %p1296_p11 = pneg %p1295_p10  ;;  %p1302_p4 = por %p1301_p5, %p1300_p2 }
  0x25   : > { %p1303_p3 = pnand %p1302_p4, %p1296_p11 }
  0x27   : > { %1306 = shalt.err (!%p1303_p3)
}
  0x28   : > { %s1307_s29 = scalar_lea.vmem %s1666_s10, 2048  ;;  %s1534_s4 = smov [#allocation6]  }
  0x29   : > { %p1308_p8 = scmp.ne.s32.totalorder %s1666_s10, %s1307_s29  ;;  %s1312_s6 = sshll.u32 %s1534_s4, 4  ;;  %s1313_s6 = int_to_ptr.vmem [resolvable:$false] %s1312_s6 }
  0x2a   : > { %s1314_s28 = scalar_lea.vmem %s1313_s6, 4096  ;;  %p1315_p7 = scmp.lt.s32.totalorder %s1666_s10, %s1313_s6 }
  0x2b   : > { %p1310_p10 = pnand %p1308_p8, %p2100_p9  ;;  %p1316_p12 = scmp.lt.s32.totalorder %s1314_s28, %s1307_s29 }
  0x2d   : > { %p1311_p0 = pneg %p1310_p10  ;;  %p1317_p13 = por %p1316_p12, %p1315_p7 }
  0x2f   : > { %p1318_p2 = pnand %p1317_p13, %p1311_p0 }
  0x31   : > { %1321 = shalt.err (!%p1318_p2)
}
  0x32   : > { %s1535_s5 = smov 384   ;;  %s2090_s7 = smov 128  }
  0x33   : > { %s2091_s9 = smov 8   ;;  %p229_p0 = scmp.lt.s32.totalorder %s1532_s25, 13 }
  0x34   : > { %1164 = dma.hbm_to_vmem [thread:$0]  (!%p1662_p6), %s1658_s8, 2048, %s1666_s10, %s1669_s30, %s1535_s5, %s2090_s7, %s2091_s9  }
  0x35   : > { %p2116_p3 = scmp.ge.s32.totalorder %s1532_s25, 1  ;;  %s1707_s4 = sadd.s32 4294967295, %s1532_s25  }
  0x36   : > { %s952_s6 = sadd.s32 4294967294, %s1532_s25   ;;  %s2168_s26 = smov (%p1638_p1, %s37_s26), 0 }
  0x37   : > { %p1702_p4 = pnand %p2116_p3, %p229_p0  ;;  %2118 = sst [smem:[#allocation20_spill]] %s2168_s26 }
  0x38   : > { %s41_s28 = sadd.s32 1, %s1528_s24  ;;  %s50_s8 = sadd.s32 1, %s1512_s20 }
  0x39   : > { %s2117_s29 = scalar_select %p1702_p4, 1, 0 }
  0x3a   : > { %s2170_s28 = smov (!%p1638_p1, %s41_s28), %s1528_s24  ;;  %p57_p7 = scmp.ne.s32.totalorder %s1512_s20, %s1508_s19 }
  0x3b   : > { %p63_p11 = scmp.ne.s32.totalorder %s1508_s19, %s1504_s18  ;;  %p43_p5 = scmp.ge.s32.totalorder %s2170_s28, 4 }
  0x3c   : > { %p64_p8 = scmp.eq.s32.totalorder %s1707_s4, 0  ;;  %p2119_p10 = scmp.eq.s32.totalorder %s1532_s25, 0 }
  0x3d   : > { %s74_s5 = ssub.s32 %s1524_s23, %s2168_s26  ;;  %s2172_s28 = smov (%p43_p5, %s2170_s28), 0 }
  0x3e   : > { %p1728_p12 = por %p2119_p10, %p57_p7  ;;  %2121 = sst [smem:[#allocation21_spill]] %s2172_s28 }
  0x3f   : > { %p1736_p1 = por %p64_p8, %p63_p11  ;;  %p76_p13 = scmp.eq.s32.totalorder %s74_s5, 0 }
  0x40   : > { %s45_s18 = ssub.s32 %s1528_s24, %s2172_s28  ;;  %p2123_p2 = scmp.ne.s32.totalorder %s1496_s16, %s1492_s15 }
  0x41   : > { %s2122_s27 = scalar_select %p1736_p1, 1, 0 }
  0x42   : > { %p1745_p0 = por %p2123_p2, %p64_p8  ;;  %p48_p3 = scmp.eq.s32.totalorder %s45_s18, 0 }
  0x43   : > { %s129_s9 = sor.u32 %s74_s5, %s45_s18  ;;  %s2125_s1 = sadd.s32 1, %s1500_s17 }
  0x44   : > { %s2124_s7 = scalar_select %p1745_p0, 1, 0 }
  0x45   : > { %s1752_s26 = scalar_select %p76_p13, %s1500_s17, %s2125_s1  }
  0x46   : > { %s1755_s3 = scalar_select %p48_p3, %s1512_s20, %s50_s8  }
  0x47   : > { %2126 = sst [smem:[#allocation22_spill]] %s1752_s26  ;;  %p130_p7 = scmp.eq.s32.totalorder %s129_s9, 0 }
  0x48   : > { %2127 = sst [smem:[#allocation23_spill]] %s1755_s3  ;;  %s132_s21 = sadd.s32 1, %s1488_s14 }
  0x49   : > { %p142_p11 = scmp.ne.s32.totalorder %s1488_s14, %s1484_s13  ;;  %p143_p5 = scmp.eq.s32.totalorder %s1707_s4, 11 }
  0x4a   : > { %s1762_s15 = scalar_select %p130_p7, %s1488_s14, %s132_s21  }
  0x4b   : > { %p1764_p8 = por %p143_p5, %p142_p11  ;;  %p148_p10 = scmp.ne.s32.totalorder %s1484_s13, %s1480_s12 }
  0x4c   : > { %2128 = sst [smem:[#allocation24_spill]] %s1762_s15  ;;  %p149_p2 = scmp.eq.s32.totalorder %s952_s6, 11 }
  0x4d   : > { %s2129_s28 = scalar_select %p1764_p8, 1, 0 }
  0x4e   : > { %s169_s1 = sand.u32 1, %s1512_s20   ;;  %p1771_p13 = por %p149_p2, %p148_p10 }
  0x4f   : > { %s955_s5 = sshll.u32 %s169_s1, 8  ;;  %s972_s9 = sshll.u32 %s1528_s24, 12 }
  0x50   : > { %s2130_s8 = scalar_select %p1771_p13, 1, 0 }
  0x51   : > { %s173_s18 = scalar_lea.vmem [#allocation3], %s955_s5  ;;  %s1779_s21 = scalar_lea.hbm %s2083_s0, %s972_s9 }
  0x52   : > { %s181_s3 = sshll.u32 %s173_s18, 4  ;;  %p2131_p3 = scmp.lt.s32.totalorder %s1532_s25, 12  ;;  %s1781_s3 = int_to_ptr.vmem [resolvable:$true] %s181_s3 }
  0x53   : > { %s960_s5 = sshll.u32 %s1524_s23, 4  ;;  %s2133_s18 = sand.u32 1, %s1500_s17  }
  0x54   : > { %p1787_p7 = pnand %p2131_p3, %p1728_p12  ;;  %s1794_s24 = scalar_lea.vmem [#allocation8], %s2133_s18 }
  0x55   : > { %s1800_s20 = scalar_lea.hbm %s2085_s2, %s960_s5  ;;  %s1802_s10 = scalar_lea.sflag [#allocation4], %s169_s1 }
  0x56   : > { %s1322_s15 = scalar_lea.hbm %s1779_s21, 4096  ;;  %p1324_p11 = pneg %p1787_p7 }
  0x57   : > { %p1323_p12 = scmp.ne.s32.totalorder %s1779_s21, %s1322_s15  ;;  %s1327_s17 = scalar_lea.hbm %s2083_s0, 16384 }
  0x58   : > { %p1328_p2 = scmp.lt.u32.totalorder %s1779_s21, %s2083_s0  ;;  %p1329_p3 = scmp.lt.u32.totalorder %s1327_s17, %s1322_s15 }
  0x59   : > { %p1325_p5 = pnand %p1324_p11, %p1323_p12  ;;  %p1331_p13 = scmp.lt.u32.totalorder %s1322_s15, %s1779_s21 }
  0x5a   : > { %p1330_p9 = por %p1329_p3, %p1328_p2 }
  0x5b   : > { %p1326_p10 = pneg %p1325_p5 }
  0x5c   : > { %p1332_p8 = por %p1331_p13, %p1330_p9 }
  0x5e   : > { %p1333_p0 = pnand %p1332_p8, %p1326_p10 }
  0x60   : > { %1336 = shalt.err (!%p1333_p0)
}
  0x61   : > { %s1337_s1 = scalar_lea.vmem %s1781_s3, 4096  ;;  %s1538_s23 = smov [#allocation3]  }
  0x62   : > { %p1338_p12 = scmp.ne.s32.totalorder %s1781_s3, %s1337_s1  ;;  %s1342_s5 = sshll.u32 %s1538_s23, 4  ;;  %s1343_s5 = int_to_ptr.vmem [resolvable:$false] %s1342_s5 }
  0x63   : > { %s1344_s14 = scalar_lea.vmem %s1343_s5, 8192  ;;  %p1345_p4 = scmp.lt.s32.totalorder %s1781_s3, %s1343_s5 }
  0x64   : > { %p1340_p5 = pnand %p1338_p12, %p1324_p11  ;;  %p1346_p2 = scmp.lt.s32.totalorder %s1344_s14, %s1337_s1 }
  0x66   : > { %p1341_p1 = pneg %p1340_p5  ;;  %p1347_p3 = por %p1346_p2, %p1345_p4 }
  0x68   : > { %p1348_p9 = pnand %p1347_p3, %p1341_p1 }
  0x6a   : > { %1351 = shalt.err (!%p1348_p9)
}
  0x6b   : > { %s2134_s17 = smov 8   ;;  %s2135_s15 = smov 128  }
  0x6c   : > { %1161 = dma.hbm_to_vmem [thread:$0]  (!%p1787_p7), %s1779_s21, 4096, %s1781_s3, %s1802_s10, %s2135_s15, %s2135_s15, %s2134_s17  }
  0x6d   : > { %s2136_s22 = sshll.u32 %s1794_s24, 4  ;;  %s1352_s26 = scalar_lea.hbm %s1800_s20, 16  ;;  %s225_s22 = int_to_ptr.vmem [resolvable:$true] %s2136_s22 }
  0x6e   : > { %p1353_p4 = scmp.ne.s32.totalorder %s1800_s20, %s1352_s26  ;;  %p2137_p1 = pneg %p1662_p6 }
  0x6f   : > { %s1357_s18 = scalar_lea.hbm %s2085_s2, 48  ;;  %p1358_p13 = scmp.lt.u32.totalorder %s1800_s20, %s2085_s2 }
  0x70   : > { %p1355_p0 = pnand %p1353_p4, %p2137_p1  ;;  %p1359_p11 = scmp.lt.u32.totalorder %s1357_s18, %s1352_s26 }
  0x71   : > { %p1361_p12 = scmp.lt.u32.totalorder %s1352_s26, %s1800_s20 }
  0x72   : > { %p1356_p8 = pneg %p1355_p0  ;;  %p1360_p10 = por %p1359_p11, %p1358_p13 }
  0x74   : > { %p1362_p7 = por %p1361_p12, %p1360_p10 }
  0x76   : > { %p1363_p5 = pnand %p1362_p7, %p1356_p8 }
  0x78   : > { %1366 = shalt.err (!%p1363_p5)
}
  0x79   : > { %s1367_s3 = scalar_lea.vmem %s225_s22, 16  ;;  %p2138_p3 = pmov %p2137_p1 }
  0x7a   : > { %p1368_p2 = scmp.ne.s32.totalorder %s225_s22, %s1367_s3  ;;  %s1539_s24 = smov [#allocation8]  }
  0x7b   : > { %s1372_s21 = sshll.u32 %s1539_s24, 4  ;;  %s1373_s21 = int_to_ptr.vmem [resolvable:$false] %s1372_s21 }
  0x7c   : > { %p1370_p9 = pnand %p1368_p2, %p2138_p3  ;;  %s1374_s10 = scalar_lea.vmem %s1373_s21, 32 }
  0x7d   : > { %p1375_p1 = scmp.lt.s32.totalorder %s225_s22, %s1373_s21  ;;  %p1376_p0 = scmp.lt.s32.totalorder %s1374_s10, %s1367_s3 }
  0x7e   : > { %p1371_p4 = pneg %p1370_p9 }
  0x7f   : > { %p1377_p11 = por %p1376_p0, %p1375_p1 }
  0x81   : > { %p1378_p13 = pnand %p1377_p11, %p1371_p4 }
  0x83   : > { %1381 = shalt.err (!%p1378_p13)
}
  0x84   : > { %1167 = dma.hbm_to_vmem [thread:$0]  (!%p1662_p6), %s1800_s20, 16, %s225_s22, %s1669_s30  }
  0x85   : > { %p2139_p8 = scmp.ne.s32.totalorder %s2117_s29, 0 }
  0x86   : > { %s235_s5 = sand.u32 (!%p2139_p8), 1, %s1508_s19   ;;  %p2140_p10 = scmp.ne.s32.totalorder (!%p2139_p8), %s2122_s27, 0 }
  0x87   : > { %233 = sbr.rel (%p2139_p8) target bundleno = 442 (0x1ba), region = 32  ;;  %s962_s14 = sshll.u32 (!%p2139_p8), %s235_s5, 8 }
  0x88   : > { %s236_s17 = scalar_lea.sflag (!%p2139_p8), [#allocation4], %s235_s5  ;;  %s1858_s15 = scalar_lea.vmem (!%p2139_p8), [#allocation3], %s962_s14 }
  0x8e   : > { %1467 = dma.done.wait (%p2140_p10), %s236_s17, 4096  }
  0x8f   : > { %1469 = vsyncadd (%p2140_p10), %s236_s17, 4294963200  ;;  %s244_s20 = sand.u32 1, %s1707_s4   ;;  %s246_s30 = sand.u32 1, %s1496_s16  }
  0x90   : > { %s963_s11 = sshll.u32 %s246_s30, 7  ;;  %s245_s29 = scalar_lea.sflag [#allocation7], %s244_s20 }
  0x91   : > { %s1868_s22 = scalar_lea.vmem [#allocation6], %s963_s11  ;;  %p2141_p6 = scmp.ne.s32.totalorder %s2124_s7, 0 }
  0x93   : > { %1471 = dma.done.wait (%p2141_p6), %s245_s29, 2064  }
  0x94   : > { %1473 = vsyncadd (%p2141_p6), %s245_s29, 4294965232  ;;  %v391_v0 = vld [vmem:[%s1868_s22] sm:$0xff]  ;;  %v392_v1 = vld [vmem:[%s1868_s22 + $0x8] sm:$0xff]  ;;  %s285_s7 = sand.u32 1, %s1484_s13   ;;  %s256_s27 = scalar_lea.vmem [#allocation8], %s246_s30 }
  0x95   : > { %v393_v2 = vld [vmem:[%s1868_s22 + $0x10] sm:$0xff]  ;;  %v1101_v3 = vpack.c.bf16 %v392_v1, %v391_v0  ;;  %v394_v4 = vld [vmem:[%s1868_s22 + $0x18] sm:$0xff]  ;;  %v395_v6 = vld [vmem:[%s1868_s22 + $0x20] sm:$0xff]  ;;  %s964_s4 = sshll.u32 %s285_s7, 8  ;;  %s2142_s6 = sld [smem:[#allocation17_spill]] }
  0x96   : > { %v1105_v5 = vpack.c.bf16 %v394_v4, %v393_v2  ;;  %v396_v7 = vld [vmem:[%s1868_s22 + $0x28] sm:$0xff]  ;;  %v359_v9 = vld [vmem:[%s1858_s15] sm:$0xff]  ;;  %v397_v11 = vld [vmem:[%s1868_s22 + $0x30] sm:$0xff]  ;;  %s1933_s26 = scalar_lea.vmem [#allocation9], %s964_s4  ;;  %s2143_s9 = sld [smem:[#allocation16_spill]] }
  0x97   : > { %1102 = vmatprep.subr.bf16.mxu0 %v1101_v3  ;;  %1133 = vmatprep.subr.bf16.mxu1 %v1101_v3  ;;  %v1109_v8 = vpack.c.bf16 %v396_v7, %v395_v6  ;;  %v375_v10 = vld [vmem:[%s1858_s15 + $0x80] sm:$0xff]  ;;  %v398_v12 = vld [vmem:[%s1868_s22 + $0x38] sm:$0xff]  ;;  %v400_v15 = vld [vmem:[%s1868_s22 + $0x48] sm:$0xff]  ;;  %s818_s3 = sshll.u32 %s1933_s26, 4  ;;  %s2144_s10 = sld [smem:[#allocation26_spill]]  ;;  %s1997_s3 = int_to_ptr.vmem [resolvable:$true] %s818_s3 }
  0x98   : > { %1104 = vmatpush3.bf16.msra.mxu0 %v1101_v3  ;;  %1141 = vmatpush3.bf16.msra.mxu1 %v1101_v3  ;;  %v1113_v13 = vpack.c.bf16 %v398_v12, %v397_v11  ;;  %v399_v14 = vld [vmem:[%s1868_s22 + $0x40] sm:$0xff]  ;;  %v401_v17 = vld [vmem:[%s1868_s22 + $0x50] sm:$0xff]  ;;  %v402_v18 = vld [vmem:[%s1868_s22 + $0x58] sm:$0xff]  ;;  %s2007_s14 = scalar_lea.sflag [#allocation5], %s285_s7  ;;  %s1382_s17 = scalar_lea.vmem %s1997_s3, 4096 }
  0x99   : > { %1106 = vmatprep.subr.bf16.mxu0 %v1105_v5  ;;  %1134 = vmatprep.subr.bf16.mxu1 %v1105_v5  ;;  %v1117_v16 = vpack.c.bf16 %v400_v15, %v399_v14  ;;  %v1121_v19 = vpack.c.bf16 %v402_v18, %v401_v17  ;;  %v403_v20 = vld [vmem:[%s1868_s22 + $0x60] sm:$0xff]  ;;  %v404_v21 = vld [vmem:[%s1868_s22 + $0x68] sm:$0xff]  ;;  %v405_v23 = vld [vmem:[%s1868_s22 + $0x70] sm:$0xff]  ;;  %p1383_p12 = scmp.ne.s32.totalorder %s1997_s3, %s1382_s17  ;;  %p2145_p7 = scmp.ne.s32.totalorder %s2129_s28, 0 }
  0x9a   : > { %1053 = vmatprep.mubr.f32.mxu0 %v359_v9  ;;  %1077 = vmatprep.mubr.f32.mxu1 %v375_v10  ;;  %v1125_v22 = vpack.c.bf16 %v404_v21, %v403_v20  ;;  %v406_v24 = vld [vmem:[%s1868_s22 + $0x78] sm:$0xff]  ;;  %v360_v26 = vld [vmem:[%s1858_s15 + $0x8] sm:$0xff]  ;;  %v361_v28 = vld [vmem:[%s1858_s15 + $0x10] sm:$0xff] }
  0x9b   : > { %v1129_v25 = vpack.c.bf16 %v406_v24, %v405_v23  ;;  %v376_v27 = vld [vmem:[%s1858_s15 + $0x88] sm:$0xff]  ;;  %v377_v29 = vld [vmem:[%s1858_s15 + $0x90] sm:$0xff]  ;;  %v362_v30 = vld [vmem:[%s1858_s15 + $0x18] sm:$0xff]  ;;  %s1149_s18 = smul.u32 96, %s2142_s6  ;;  %p1384_p5 = pnand %p1383_p12, %p2145_p7 }
  0x9c   : > { %1108 = vmatpush3.bf16.msra.mxu0 %v1105_v5  ;;  %1142 = vmatpush3.bf16.msra.mxu1 %v1105_v5  ;;  %v378_v31 = vld [vmem:[%s1858_s15 + $0x98] sm:$0xff]  ;;  %v363_v32 = vld [vmem:[%s1858_s15 + $0x20] sm:$0xff]  ;;  %v364_v34 = vld [vmem:[%s1858_s15 + $0x28] sm:$0xff] }
  0x9d   : > { %1110 = vmatprep.subr.bf16.mxu0 %v1109_v8  ;;  %1135 = vmatprep.subr.bf16.mxu1 %v1109_v8  ;;  %v379_v33 = vld [vmem:[%s1858_s15 + $0xa0] sm:$0xff]  ;;  %v380_v35 = vld [vmem:[%s1858_s15 + $0xa8] sm:$0xff]  ;;  %v365_v36 = vld [vmem:[%s1858_s15 + $0x30] sm:$0xff]  ;;  %s815_s1 = sadd.s32 %s2143_s9, %s1149_s18  ;;  %p1385_p2 = pneg %p1384_p5 }
  0x9e   : > { %v381_v37 = vld [vmem:[%s1858_s15 + $0xb0] sm:$0xff]  ;;  %v366_v38 = vld [vmem:[%s1858_s15 + $0x38] sm:$0xff]  ;;  %v367_v40 = vld [vmem:[%s1858_s15 + $0x40] sm:$0xff]  ;;  %s969_s23 = sshll.u32 %s815_s1, 7 }
  0x9f   : > { %v382_v39 = vld [vmem:[%s1858_s15 + $0xb8] sm:$0xff]  ;;  %v383_v41 = vld [vmem:[%s1858_s15 + $0xc0] sm:$0xff]  ;;  %v368_v42 = vld [vmem:[%s1858_s15 + $0x48] sm:$0xff]  ;;  %s1993_s5 = scalar_lea.hbm %s2144_s10, %s969_s23 }
  0xa0   : > { %1112 = vmatpush3.bf16.msra.mxu0 %v1109_v8  ;;  %1143 = vmatpush3.bf16.msra.mxu1 %v1109_v8  ;;  %v384_v43 = vld [vmem:[%s1858_s15 + $0xc8] sm:$0xff]  ;;  %v369_v44 = vld [vmem:[%s1858_s15 + $0x50] sm:$0xff]  ;;  %v370_v46 = vld [vmem:[%s1858_s15 + $0x58] sm:$0xff] }
  0xa1   : > { %1114 = vmatprep.subr.bf16.mxu0 %v1113_v13  ;;  %1136 = vmatprep.subr.bf16.mxu1 %v1113_v13  ;;  %v385_v45 = vld [vmem:[%s1858_s15 + $0xd0] sm:$0xff]  ;;  %v386_v47 = vld [vmem:[%s1858_s15 + $0xd8] sm:$0xff]  ;;  %v371_v48 = vld [vmem:[%s1858_s15 + $0x60] sm:$0xff] }
  0xa2   : > { %v387_v49 = vld [vmem:[%s1858_s15 + $0xe0] sm:$0xff]  ;;  %v372_v50 = vld [vmem:[%s1858_s15 + $0x68] sm:$0xff]  ;;  %v373_v52 = vld [vmem:[%s1858_s15 + $0x70] sm:$0xff] }
  0xa3   : > { %v388_v51 = vld [vmem:[%s1858_s15 + $0xe8] sm:$0xff]  ;;  %v389_v53 = vld [vmem:[%s1858_s15 + $0xf0] sm:$0xff]  ;;  %v374_v54 = vld [vmem:[%s1858_s15 + $0x78] sm:$0xff] }
  0xa4   : > { %1116 = vmatpush3.bf16.msra.mxu0 %v1113_v13  ;;  %1144 = vmatpush3.bf16.msra.mxu1 %v1113_v13  ;;  %v390_v55 = vld [vmem:[%s1858_s15 + $0xf8] sm:$0xff]  ;;  %v1927_v56 = vld [vmem:[%s256_s27] ss:$0 sm:$0xff]  ;;  %s1540_s15 = smov [#allocation9]  }
  0xa5   : > { %1118 = vmatprep.subr.bf16.mxu0 %v1117_v16  ;;  %1137 = vmatprep.subr.bf16.mxu1 %v1117_v16  ;;  %s1386_s20 = sshll.u32 %s1540_s15, 4  ;;  %s1387_s20 = int_to_ptr.vmem [resolvable:$false] %s1386_s20 }
  0xa6   : > { %s1388_s30 = scalar_lea.vmem %s1387_s20, 8192  ;;  %p1389_p3 = scmp.lt.s32.totalorder %s1997_s3, %s1387_s20 }
  0xa7   : > { %p1390_p9 = scmp.lt.s32.totalorder %s1388_s30, %s1382_s17 }
  0xa8   : > { %1120 = vmatpush3.bf16.msra.mxu0 %v1117_v16  ;;  %1145 = vmatpush3.bf16.msra.mxu1 %v1117_v16 }
  0xa9   : > { %1122 = vmatprep.subr.bf16.mxu0 %v1121_v19  ;;  %1138 = vmatprep.subr.bf16.mxu1 %v1121_v19  ;;  %p1391_p4 = por %p1390_p9, %p1389_p3 }
  0xab   : > { %p1392_p1 = pnand %p1391_p4, %p1385_p2 }
  0xac   : > { %1124 = vmatpush3.bf16.msra.mxu0 %v1121_v19  ;;  %1146 = vmatpush3.bf16.msra.mxu1 %v1121_v19 }
  0xad   : > { %1126 = vmatprep.subr.bf16.mxu0 %v1125_v22  ;;  %1139 = vmatprep.subr.bf16.mxu1 %v1125_v22 }
  0xb0   : > { %1128 = vmatpush3.bf16.msra.mxu0 %v1125_v22  ;;  %1147 = vmatpush3.bf16.msra.mxu1 %v1125_v22 }
  0xb1   : > { %1130 = vmatprep.subr.bf16.mxu0 %v1129_v25  ;;  %1140 = vmatprep.subr.bf16.mxu1 %v1129_v25 }
  0xb4   : > { %1132 = vmatpush3.bf16.msra.mxu0 %v1129_v25  ;;  %1148 = vmatpush3.bf16.msra.mxu1 %v1129_v25 }
  0xb7   : > { %1054 = vmatmul.mubr.f32.vlgmr.msra.gmra.mrb[0].mxu0 %v360_v26  ;;  %1078 = vmatmul.mubr.f32.vlgmr.msra.gmra.mrb[0].mxu1 %v376_v27 }
  0xb8   : > { %1056 = vmatprep.mubr.f32.mxu0 %v361_v28  ;;  %1080 = vmatprep.mubr.f32.mxu1 %v377_v29 }
  0xbb   : > { %1057 = vmatmul.mubr.f32.gmra.mrb[2].mxu0 %v362_v30  ;;  %1081 = vmatmul.mubr.f32.gmra.mrb[2].mxu1 %v378_v31 }
  0xbc   : > { %1059 = vmatprep.mubr.f32.mxu0 %v363_v32  ;;  %1083 = vmatprep.mubr.f32.mxu1 %v379_v33 }
  0xbf   : > { %1060 = vmatmul.mubr.f32.gmra.mrb[4].mxu0 %v364_v34  ;;  %1084 = vmatmul.mubr.f32.gmra.mrb[4].mxu1 %v380_v35 }
  0xc0   : > { %1062 = vmatprep.mubr.f32.mxu0 %v365_v36  ;;  %1086 = vmatprep.mubr.f32.mxu1 %v381_v37 }
  0xc3   : > { %1063 = vmatmul.mubr.f32.gmra.mrb[6].mxu0 %v366_v38  ;;  %1087 = vmatmul.mubr.f32.gmra.mrb[6].mxu1 %v382_v39 }
  0xc4   : > { %1065 = vmatprep.mubr.f32.mxu0 %v367_v40  ;;  %1089 = vmatprep.mubr.f32.mxu1 %v383_v41 }
  0xc7   : > { %1066 = vmatmul.mubr.f32.gmra.mrb[8].mxu0 %v368_v42  ;;  %1090 = vmatmul.mubr.f32.gmra.mrb[8].mxu1 %v384_v43 }
  0xc8   : > { %1068 = vmatprep.mubr.f32.mxu0 %v369_v44  ;;  %1092 = vmatprep.mubr.f32.mxu1 %v385_v45 }
  0xcb   : > { %1069 = vmatmul.mubr.f32.gmra.mrb[10].mxu0 %v370_v46  ;;  %1093 = vmatmul.mubr.f32.gmra.mrb[10].mxu1 %v386_v47 }
  0xcc   : > { %1071 = vmatprep.mubr.f32.mxu0 %v371_v48  ;;  %1095 = vmatprep.mubr.f32.mxu1 %v387_v49 }
  0xcf   : > { %1072 = vmatmul.mubr.f32.gmra.mrb[12].mxu0 %v372_v50  ;;  %1096 = vmatmul.mubr.f32.gmra.mrb[12].mxu1 %v388_v51 }
  0xd0   : > { %1074 = vmatprep.mubr.f32.mxu0 %v373_v52  ;;  %1098 = vmatprep.mubr.f32.mxu1 %v389_v53 }
  0xd3   : > { %1075 = vmatmul.mubr.f32.gmra.mrb[14].mxu0 %v374_v54  ;;  %1099 = vmatmul.mubr.f32.gmra.mrb[14].mxu1 %v390_v55 }
 0x18a   : > { %v1055_v57 = vpop.f32.mrb[0].mxu0  ;;  %v1079_v58 = vpop.f32.mrb[0].mxu1 }
 0x18b   : > { %v739_v59 = vadd.f32 %v1055_v57, %v1927_v56  ;;  %v755_v60 = vadd.f32 %v1079_v58, %v1927_v56  ;;  %v473_v61 = vpop.f32.mrb[1].mxu0  ;;  %v553_v62 = vpop.f32.mrb[1].mxu1 }
 0x18c   : > { %v738_v63 = vadd.f32 %v1927_v56, %v473_v61  ;;  %v754_v0 = vadd.f32 %v1927_v56, %v553_v62 }
 0x18d   : > { %771 = vst [vmem:[%s1933_s26 + $0x8] sm:$0xff] %v739_v59  ;;  %787 = vst [vmem:[%s1933_s26 + $0x88] sm:$0xff] %v755_v60 }
 0x18e   : > { %770 = vst [vmem:[%s1933_s26] sm:$0xff] %v738_v63  ;;  %786 = vst [vmem:[%s1933_s26 + $0x80] sm:$0xff] %v754_v0  ;;  %v1058_v1 = vpop.f32.mrb[2].mxu0  ;;  %v1082_v2 = vpop.f32.mrb[2].mxu1 }
 0x18f   : > { %v741_v3 = vadd.f32 %v1058_v1, %v1927_v56  ;;  %v757_v4 = vadd.f32 %v1082_v2, %v1927_v56  ;;  %v483_v5 = vpop.f32.mrb[3].mxu0  ;;  %v563_v6 = vpop.f32.mrb[3].mxu1 }
 0x190   : > { %v740_v7 = vadd.f32 %v1927_v56, %v483_v5  ;;  %v756_v8 = vadd.f32 %v1927_v56, %v563_v6 }
 0x191   : > { %773 = vst [vmem:[%s1933_s26 + $0x18] sm:$0xff] %v741_v3  ;;  %789 = vst [vmem:[%s1933_s26 + $0x98] sm:$0xff] %v757_v4 }
 0x192   : > { %772 = vst [vmem:[%s1933_s26 + $0x10] sm:$0xff] %v740_v7  ;;  %788 = vst [vmem:[%s1933_s26 + $0x90] sm:$0xff] %v756_v8  ;;  %v1061_v9 = vpop.f32.mrb[4].mxu0  ;;  %v1085_v10 = vpop.f32.mrb[4].mxu1 }
 0x193   : > { %v743_v11 = vadd.f32 %v1061_v9, %v1927_v56  ;;  %v759_v12 = vadd.f32 %v1085_v10, %v1927_v56  ;;  %v493_v13 = vpop.f32.mrb[5].mxu0  ;;  %v573_v14 = vpop.f32.mrb[5].mxu1 }
 0x194   : > { %v742_v15 = vadd.f32 %v1927_v56, %v493_v13  ;;  %v758_v16 = vadd.f32 %v1927_v56, %v573_v14 }
 0x195   : > { %775 = vst [vmem:[%s1933_s26 + $0x28] sm:$0xff] %v743_v11  ;;  %791 = vst [vmem:[%s1933_s26 + $0xa8] sm:$0xff] %v759_v12 }
 0x196   : > { %774 = vst [vmem:[%s1933_s26 + $0x20] sm:$0xff] %v742_v15  ;;  %790 = vst [vmem:[%s1933_s26 + $0xa0] sm:$0xff] %v758_v16  ;;  %v1064_v17 = vpop.f32.mrb[6].mxu0  ;;  %v1088_v18 = vpop.f32.mrb[6].mxu1 }
 0x197   : > { %v745_v19 = vadd.f32 %v1064_v17, %v1927_v56  ;;  %v761_v20 = vadd.f32 %v1088_v18, %v1927_v56  ;;  %v503_v21 = vpop.f32.mrb[7].mxu0  ;;  %v583_v22 = vpop.f32.mrb[7].mxu1 }
 0x198   : > { %v744_v23 = vadd.f32 %v1927_v56, %v503_v21  ;;  %v760_v24 = vadd.f32 %v1927_v56, %v583_v22 }
 0x199   : > { %777 = vst [vmem:[%s1933_s26 + $0x38] sm:$0xff] %v745_v19  ;;  %793 = vst [vmem:[%s1933_s26 + $0xb8] sm:$0xff] %v761_v20 }
 0x19a   : > { %776 = vst [vmem:[%s1933_s26 + $0x30] sm:$0xff] %v744_v23  ;;  %792 = vst [vmem:[%s1933_s26 + $0xb0] sm:$0xff] %v760_v24  ;;  %v1067_v25 = vpop.f32.mrb[8].mxu0  ;;  %v1091_v26 = vpop.f32.mrb[8].mxu1 }
 0x19b   : > { %v747_v27 = vadd.f32 %v1067_v25, %v1927_v56  ;;  %v763_v28 = vadd.f32 %v1091_v26, %v1927_v56  ;;  %v513_v29 = vpop.f32.mrb[9].mxu0  ;;  %v593_v30 = vpop.f32.mrb[9].mxu1 }
 0x19c   : > { %v746_v31 = vadd.f32 %v1927_v56, %v513_v29  ;;  %v762_v32 = vadd.f32 %v1927_v56, %v593_v30 }
 0x19d   : > { %779 = vst [vmem:[%s1933_s26 + $0x48] sm:$0xff] %v747_v27  ;;  %795 = vst [vmem:[%s1933_s26 + $0xc8] sm:$0xff] %v763_v28 }
 0x19e   : > { %778 = vst [vmem:[%s1933_s26 + $0x40] sm:$0xff] %v746_v31  ;;  %794 = vst [vmem:[%s1933_s26 + $0xc0] sm:$0xff] %v762_v32  ;;  %v1070_v33 = vpop.f32.mrb[10].mxu0  ;;  %v1094_v34 = vpop.f32.mrb[10].mxu1 }
 0x19f   : > { %v749_v35 = vadd.f32 %v1070_v33, %v1927_v56  ;;  %v765_v36 = vadd.f32 %v1094_v34, %v1927_v56  ;;  %v523_v37 = vpop.f32.mrb[11].mxu0  ;;  %v603_v38 = vpop.f32.mrb[11].mxu1 }
 0x1a0   : > { %v748_v39 = vadd.f32 %v1927_v56, %v523_v37  ;;  %v764_v40 = vadd.f32 %v1927_v56, %v603_v38 }
 0x1a1   : > { %781 = vst [vmem:[%s1933_s26 + $0x58] sm:$0xff] %v749_v35  ;;  %797 = vst [vmem:[%s1933_s26 + $0xd8] sm:$0xff] %v765_v36 }
 0x1a2   : > { %780 = vst [vmem:[%s1933_s26 + $0x50] sm:$0xff] %v748_v39  ;;  %796 = vst [vmem:[%s1933_s26 + $0xd0] sm:$0xff] %v764_v40  ;;  %v1073_v41 = vpop.f32.mrb[12].mxu0  ;;  %v1097_v42 = vpop.f32.mrb[12].mxu1 }
 0x1a3   : > { %v751_v43 = vadd.f32 %v1073_v41, %v1927_v56  ;;  %v767_v44 = vadd.f32 %v1097_v42, %v1927_v56  ;;  %v533_v45 = vpop.f32.mrb[13].mxu0  ;;  %v613_v46 = vpop.f32.mrb[13].mxu1 }
 0x1a4   : > { %v750_v47 = vadd.f32 %v1927_v56, %v533_v45  ;;  %v766_v48 = vadd.f32 %v1927_v56, %v613_v46 }
 0x1a5   : > { %783 = vst [vmem:[%s1933_s26 + $0x68] sm:$0xff] %v751_v43  ;;  %799 = vst [vmem:[%s1933_s26 + $0xe8] sm:$0xff] %v767_v44 }
 0x1a6   : > { %782 = vst [vmem:[%s1933_s26 + $0x60] sm:$0xff] %v750_v47  ;;  %798 = vst [vmem:[%s1933_s26 + $0xe0] sm:$0xff] %v766_v48  ;;  %v1076_v49 = vpop.f32.mrb[14].mxu0  ;;  %v1100_v50 = vpop.f32.mrb[14].mxu1 }
 0x1a7   : > { %v753_v51 = vadd.f32 %v1076_v49, %v1927_v56  ;;  %v769_v52 = vadd.f32 %v1100_v50, %v1927_v56  ;;  %v543_v53 = vpop.f32.mrb[15].mxu0  ;;  %v623_v54 = vpop.f32.mrb[15].mxu1 }
 0x1a8   : > { %v752_v55 = vadd.f32 %v1927_v56, %v543_v53  ;;  %v768_v57 = vadd.f32 %v1927_v56, %v623_v54 }
 0x1a9   : > { %785 = vst [vmem:[%s1933_s26 + $0x78] sm:$0xff] %v753_v51  ;;  %801 = vst [vmem:[%s1933_s26 + $0xf8] sm:$0xff] %v769_v52 }
 0x1aa   : > { %784 = vst [vmem:[%s1933_s26 + $0x70] sm:$0xff] %v752_v55  ;;  %800 = vst [vmem:[%s1933_s26 + $0xf0] sm:$0xff] %v768_v57 }
 0x1ab   : > { %1395 = shalt.err (!%p1392_p1)
}
 0x1ac   : > { %s1396_s11 = scalar_lea.hbm %s1993_s5, 4096  ;;  %s1400_s7 = scalar_lea.hbm %s2144_s10, 49152 }
 0x1ad   : > { %p1397_p0 = scmp.ne.s32.totalorder %s1993_s5, %s1396_s11  ;;  %p1401_p8 = scmp.lt.u32.totalorder %s1993_s5, %s2144_s10 }
 0x1ae   : > { %p1402_p10 = scmp.lt.u32.totalorder %s1400_s7, %s1396_s11  ;;  %p1404_p12 = scmp.lt.u32.totalorder %s1396_s11, %s1993_s5 }
 0x1af   : > { %p1398_p11 = pnand %p1397_p0, %p2145_p7 }
 0x1b0   : > { %p1403_p6 = por %p1402_p10, %p1401_p8 }
 0x1b1   : > { %p1399_p13 = pneg %p1398_p11 }
 0x1b2   : > { %p1405_p5 = por %p1404_p12, %p1403_p6 }
 0x1b4   : > { %p1406_p2 = pnand %p1405_p5, %p1399_p13 }
 0x1b6   : > { %1409 = shalt.err (!%p1406_p2)
}
 0x1b7   : > { %s1541_s26 = smov 128   ;;  %s1542_s6 = smov 384  }
 0x1b8   : > { %s1543_s9 = smov 8  }
 0x1b9   : > { %1156 = dma.vmem_to_hbm [thread:$0]  (%p2145_p7), %s1997_s3, 4096, %s1993_s5, %s2007_s14, %s1541_s26, %s1542_s6, %s1543_s9  }
 0x1ba PF: > { %p1173_p3 = scmp.ge.s32.totalorder %s1532_s25, 2  ;;  %s833_s18 = sand.u32 1, %s1480_s12  }
 0x1bb   : > { %p2146_p9 = scmp.ne.s32.totalorder %s2130_s8, 0  ;;  %s834_s1 = scalar_lea.sflag [#allocation5], %s833_s18 }
 0x1bd   : > { %p1169_p4 = pnand %p1173_p3, %p2146_p9 }
 0x1bf   : > { %1475 = dma.done.wait (!%p1169_p4), %s834_s1, 4096  }
 0x1c0   : > { %1477 = vsyncadd (!%p1169_p4), %s834_s1, 4294963200  ;;  %s22_s25 = sadd.s32 1, %s1532_s25   ;;  %s2148_s28 = sld [smem:[#allocation13_spill]] }
 0x1c1   : > { %p2036_p1 = scmp.ge.s32.totalorder %s22_s25, 14   ;;  %s2149_s14 = sld [smem:[#allocation24_spill]] }
 0x1c2   : > { %s2150_s3 = sld [smem:[#allocation14_spill]]  ;;  %s2151_s17 = sld [smem:[#allocation22_spill]] }
 0x1c3   : > { %s2152_s24 = sld [smem:[#allocation15_spill]]  ;;  %s2153_s20 = sld [smem:[#allocation23_spill]] }
 0x1c4   : > { %s2154_s21 = sld [smem:[#allocation18_spill]]  ;;  %s2155_s22 = sld [smem:[#allocation19_spill]] }
 0x1c5   : > { %s2156_s8 = sld [smem:[#allocation20_spill]]  ;;  %s2157_s5 = sld [smem:[#allocation21_spill]] }
 0x1c6   : > { %s2159_s12 = smov %s1484_s13  ;;  %s2160_s13 = smov %s2148_s28 }
 0x1c7   : > { %s2161_s15 = smov %s1496_s16  ;;  %s2163_s18 = smov %s1508_s19 }
 0x1c8   : > { %s2162_s16 = smov %s2150_s3  ;;  %21 = sbr.rel (!%p2036_p1) target bundleno = 15 (0xf), region = 109 }
 0x1c9   : > { %s2164_s19 = smov %s2152_s24 }
 0x1cb   : > { %s2165_s23 = smov %s2156_s8  ;;  %s2166_s24 = smov %s2157_s5 }
 0x1cf   :  { %839 = vsyncpa [#allocation4], 1 }
 0x1d0   :  { %841 = vsyncpa [#allocation4 + $0x1], 1 }
 0x1d1   :  { %842 = vsyncpa [#allocation7], 1 }
 0x1d2   :  { %844 = vsyncpa [#allocation7 + $0x1], 1 }
 0x1d3   :  { %845 = vsyncpa [#allocation5], 1 }
 0x1d4   :  { %847 = vsyncpa [#allocation5 + $0x1], 1 }

</bundles_post_ra>
